<compile_context>
chip_gen: v5e
topology: v5e:2x2
jax: 0.10.0
libtpu: 0.0.40
codegen_flags: <defaults>
</compile_context>

<pallas_src>
import math
import functools

import jax
import jax.numpy as jnp
from jax.experimental import pallas as pl
from jax.experimental.pallas import tpu as pltpu


def _round_up(x: int, m: int) -> int:
    return (x + m - 1) // m * m


def _nerf_posenc_kernel(x_ref, o_ref, *, num_frequencies):
    """x_ref: (F, TN) transposed coords tile; o_ref: (out_dim, TN) tile.

    Output rows: [coords (F rows) | sin/cos pairs per (dim j, freq i)] in the
    same interleaved order as the PyTorch nested loops.
    """
    f = len(num_frequencies)
    total_nf = int(sum(num_frequencies))

    x = x_ref[...].astype(jnp.float32)                        # (F, TN)

    # Pass-through coordinates (rows 0..F-1 of the transposed output).
    o_ref[0:f, :] = x.astype(o_ref.dtype)

    if total_nf == 0:
        return

    # For each input dim j compute sin/cos(pi*x_j) once, then use the
    # double-angle recurrence for higher frequencies:
    #   theta_{i+1} = 2*theta_i  =>  s' = 2*s*c,  c' = 1 - 2*s*s.
    # Only Python scalar constants are used -> nothing is captured by tracing,
    # and EUP/VALU work drops ~nf x vs. calling sin/cos per frequency.
    rows = []
    for j, nf in enumerate(num_frequencies):
        if nf == 0:
            continue
        xj = x[j:j + 1, :]                                    # (1, TN)
        s = jnp.sin(math.pi * xj)
        c = jnp.cos(math.pi * xj)
        rows.append(s)
        rows.append(c)
        for _ in range(nf - 1):
            s, c = 2.0 * s * c, 1.0 - 2.0 * s * s
            rows.append(s)
            rows.append(c)

    # One sublane concatenate (idle XLU) + one bulk lane-dense store instead of
    # 2*total_nf masked single-row stores.
    slab = rows[0] if len(rows) == 1 else jnp.concatenate(rows, axis=0)
    o_ref[f:f + 2 * total_nf, :] = slab.astype(o_ref.dtype)


def nerf_pos_encoding(coords, num_frequencies, *, transposed=False,
                      max_lane_tile=32768, target_steps=8):
    """Pallas TPU implementation of PosEncodingNeRF.forward.

    coords: (N, ...) array whose trailing dims flatten to in_features
            (mirrors the PyTorch `.view(N, in_features)`).
    num_frequencies: tuple of ints, len == in_features.
    transposed: if True, return the lane-dense (out_dim, N) layout and skip the
                output transpose (recommended when the consumer can take it).
    """
    num_frequencies = tuple(int(v) for v in num_frequencies)
    in_features = len(num_frequencies)
    coords = coords.reshape(coords.shape[0], in_features)
    n = coords.shape[0]
    total_nf = int(sum(num_frequencies))
    out_dim = in_features + 2 * total_nf

    # Tile selection: lane-dense (multiple of 128), derived from N targeting
    # ~target_steps grid steps (keeps grid >= 2 for v7x megacore and bounds
    # padding waste), capped so double-buffered blocks fit v5e's default
    # scoped-VMEM limit.
    n128 = _round_up(n, 128)
    tile = _round_up(pl.cdiv(n128, target_steps), 128)
    tile = max(128, min(tile, _round_up(max_lane_tile, 128), n128))
    n_pad = _round_up(n128, tile)
    grid = n_pad // tile

    # Transpose so the sample axis lands on the 128-lane axis; pad N to a
    # multiple of the tile (padding sliced off after the call).
    coords_t = coords.T
    if n_pad != n:
        coords_t = jnp.pad(coords_t, ((0, 0), (0, n_pad - n)))

    kernel = functools.partial(_nerf_posenc_kernel,
                               num_frequencies=num_frequencies)

    out_t = pl.pallas_call(
        kernel,
        out_shape=jax.ShapeDtypeStruct((out_dim, n_pad), coords.dtype),
        grid_spec=pltpu.PrefetchScalarGridSpec(
            num_scalar_prefetch=0,
            grid=(grid,),
            in_specs=[pl.BlockSpec((in_features, tile), lambda i: (0, i))],
            out_specs=pl.BlockSpec((out_dim, tile), lambda i: (0, i)),
        ),
        compiler_params=pltpu.CompilerParams(
            dimension_semantics=("parallel",)),
        cost_estimate=pl.CostEstimate(
            flops=6 * n_pad * total_nf,
            transcendentals=2 * n_pad * in_features,
            bytes_accessed=4 * n_pad * (in_features + out_dim)),
    )(coords_t)

    if transposed:
        return out_t[:, :n] if n_pad != n else out_t
    # API-compatible (N, out_dim) layout (materializes a transpose; pass
    # transposed=True to avoid it when the consumer can absorb the layout).
    return out_t.T[:n]


def nerf_pos_encoding_ref(coords, num_frequencies):
    """Pure-JAX reference mirroring the PyTorch forward exactly."""
    in_features = len(num_frequencies)
    coords = coords.reshape(coords.shape[0], in_features)
    parts = [coords]
    for j, nf in enumerate(num_frequencies):
        c = coords[..., j]
        for i in range(nf):
            parts.append(jnp.sin(2 ** i * math.pi * c)[:, None])
            parts.append(jnp.cos(2 ** i * math.pi * c)[:, None])
    return jnp.concatenate(parts, axis=-1)


if __name__ == "__main__":
    # PosEncodingNeRF(input_size=2, num_frequencies=(4, 4))
    in_features = 2
    num_frequencies = (4, 4)

    key = jax.random.PRNGKey(0)
    n = 1000   # deliberately NOT a multiple of 128/tile: exercises padding
    coords = jax.random.uniform(key, (n, in_features), dtype=jnp.float32,
                                minval=-1.0, maxval=1.0)

    out = nerf_pos_encoding(coords, num_frequencies)
    out = jax.block_until_ready(out)

    ref = nerf_pos_encoding_ref(coords, num_frequencies)
    expected_out_dim = in_features + 2 * sum(num_frequencies)
    assert out.shape == (n, expected_out_dim), out.shape
    assert jnp.allclose(out, ref, atol=1e-5, rtol=1e-5), "mismatch vs reference"

    # Transposed (lane-dense) fast path: same values, (out_dim, N) layout.
    out_t = jax.block_until_ready(
        nerf_pos_encoding(coords, num_frequencies, transposed=True))
    assert out_t.shape == (expected_out_dim, n), out_t.shape
    assert jnp.allclose(out_t, ref.T, atol=1e-5, rtol=1e-5), "transposed mismatch"

    print("KERNEL_OK")
</pallas_src>

<mosaic_0001>
module attributes {stable_mosaic.version = 11 : i64} {
  func.func @_nerf_posenc_kernel(%arg0: i32, %arg1: memref<2x128xf32, #tpu.memory_space<vmem>>, %arg2: memref<18x128xf32, #tpu.memory_space<vmem>>) attributes {dimension_semantics = [#tpu.dimension_semantics<parallel>], iteration_bounds = array<i64: 8>, scalar_prefetch = 0 : i64, scratch_operands = 0 : i64, tpu.core_type = #tpu.core_type<tc>, window_params = [{transform_indices = @transform_0, window_bounds = array<i64: 2, 128>}, {transform_indices = @transform_1, window_bounds = array<i64: 18, 128>}]} {
    %c0 = arith.constant 0 : index
    %c0_0 = arith.constant 0 : index
    %0 = vector.load %arg1[%c0, %c0_0] : memref<2x128xf32, #tpu.memory_space<vmem>>, vector<2x128xf32>
    %c0_1 = arith.constant 0 : index
    %c0_2 = arith.constant 0 : index
    %1 = vector.load %arg2[%c0_1, %c0_2] : memref<18x128xf32, #tpu.memory_space<vmem>>, vector<2x128xf32>
    tpu.vector_store %arg2[%c0_1, %c0_2], %0 {strides = array<i32>} : memref<18x128xf32, #tpu.memory_space<vmem>>, vector<2x128xf32>,
    %2 = vector.extract_strided_slice %0 {offsets = [0, 0], sizes = [1, 128], strides = [1, 1]} : vector<2x128xf32> to vector<1x128xf32>
    %cst = arith.constant 3.14159274 : f32
    %3 = vector.broadcast %cst : f32 to vector<1x128xf32>
    %4 = arith.mulf %3, %2 : vector<1x128xf32>
    %5 = math.sin %4 : vector<1x128xf32>
    %cst_3 = arith.constant 3.14159274 : f32
    %6 = vector.broadcast %cst_3 : f32 to vector<1x128xf32>
    %7 = arith.mulf %6, %2 : vector<1x128xf32>
    %8 = math.cos %7 : vector<1x128xf32>
    %cst_4 = arith.constant 2.000000e+00 : f32
    %9 = vector.broadcast %cst_4 : f32 to vector<1x128xf32>
    %10 = arith.mulf %9, %5 : vector<1x128xf32>
    %11 = arith.mulf %10, %8 : vector<1x128xf32>
    %cst_5 = arith.constant 2.000000e+00 : f32
    %12 = vector.broadcast %cst_5 : f32 to vector<1x128xf32>
    %13 = arith.mulf %12, %5 : vector<1x128xf32>
    %14 = arith.mulf %13, %5 : vector<1x128xf32>
    %cst_6 = arith.constant 1.000000e+00 : f32
    %15 = vector.broadcast %cst_6 : f32 to vector<1x128xf32>
    %16 = arith.subf %15, %14 : vector<1x128xf32>
    %cst_7 = arith.constant 2.000000e+00 : f32
    %17 = vector.broadcast %cst_7 : f32 to vector<1x128xf32>
    %18 = arith.mulf %17, %11 : vector<1x128xf32>
    %19 = arith.mulf %18, %16 : vector<1x128xf32>
    %cst_8 = arith.constant 2.000000e+00 : f32
    %20 = vector.broadcast %cst_8 : f32 to vector<1x128xf32>
    %21 = arith.mulf %20, %11 : vector<1x128xf32>
    %22 = arith.mulf %21, %11 : vector<1x128xf32>
    %cst_9 = arith.constant 1.000000e+00 : f32
    %23 = vector.broadcast %cst_9 : f32 to vector<1x128xf32>
    %24 = arith.subf %23, %22 : vector<1x128xf32>
    %cst_10 = arith.constant 2.000000e+00 : f32
    %25 = vector.broadcast %cst_10 : f32 to vector<1x128xf32>
    %26 = arith.mulf %25, %19 : vector<1x128xf32>
    %27 = arith.mulf %26, %24 : vector<1x128xf32>
    %cst_11 = arith.constant 2.000000e+00 : f32
    %28 = vector.broadcast %cst_11 : f32 to vector<1x128xf32>
    %29 = arith.mulf %28, %19 : vector<1x128xf32>
    %30 = arith.mulf %29, %19 : vector<1x128xf32>
    %cst_12 = arith.constant 1.000000e+00 : f32
    %31 = vector.broadcast %cst_12 : f32 to vector<1x128xf32>
    %32 = arith.subf %31, %30 : vector<1x128xf32>
    %33 = vector.extract_strided_slice %0 {offsets = [1, 0], sizes = [1, 128], strides = [1, 1]} : vector<2x128xf32> to vector<1x128xf32>
    %cst_13 = arith.constant 3.14159274 : f32
    %34 = vector.broadcast %cst_13 : f32 to vector<1x128xf32>
    %35 = arith.mulf %34, %33 : vector<1x128xf32>
    %36 = math.sin %35 : vector<1x128xf32>
    %cst_14 = arith.constant 3.14159274 : f32
    %37 = vector.broadcast %cst_14 : f32 to vector<1x128xf32>
    %38 = arith.mulf %37, %33 : vector<1x128xf32>
    %39 = math.cos %38 : vector<1x128xf32>
    %cst_15 = arith.constant 2.000000e+00 : f32
    %40 = vector.broadcast %cst_15 : f32 to vector<1x128xf32>
    %41 = arith.mulf %40, %36 : vector<1x128xf32>
    %42 = arith.mulf %41, %39 : vector<1x128xf32>
    %cst_16 = arith.constant 2.000000e+00 : f32
    %43 = vector.broadcast %cst_16 : f32 to vector<1x128xf32>
    %44 = arith.mulf %43, %36 : vector<1x128xf32>
    %45 = arith.mulf %44, %36 : vector<1x128xf32>
    %cst_17 = arith.constant 1.000000e+00 : f32
    %46 = vector.broadcast %cst_17 : f32 to vector<1x128xf32>
    %47 = arith.subf %46, %45 : vector<1x128xf32>
    %cst_18 = arith.constant 2.000000e+00 : f32
    %48 = vector.broadcast %cst_18 : f32 to vector<1x128xf32>
    %49 = arith.mulf %48, %42 : vector<1x128xf32>
    %50 = arith.mulf %49, %47 : vector<1x128xf32>
    %cst_19 = arith.constant 2.000000e+00 : f32
    %51 = vector.broadcast %cst_19 : f32 to vector<1x128xf32>
    %52 = arith.mulf %51, %42 : vector<1x128xf32>
    %53 = arith.mulf %52, %42 : vector<1x128xf32>
    %cst_20 = arith.constant 1.000000e+00 : f32
    %54 = vector.broadcast %cst_20 : f32 to vector<1x128xf32>
    %55 = arith.subf %54, %53 : vector<1x128xf32>
    %cst_21 = arith.constant 2.000000e+00 : f32
    %56 = vector.broadcast %cst_21 : f32 to vector<1x128xf32>
    %57 = arith.mulf %56, %50 : vector<1x128xf32>
    %58 = arith.mulf %57, %55 : vector<1x128xf32>
    %cst_22 = arith.constant 2.000000e+00 : f32
    %59 = vector.broadcast %cst_22 : f32 to vector<1x128xf32>
    %60 = arith.mulf %59, %50 : vector<1x128xf32>
    %61 = arith.mulf %60, %50 : vector<1x128xf32>
    %cst_23 = arith.constant 1.000000e+00 : f32
    %62 = vector.broadcast %cst_23 : f32 to vector<1x128xf32>
    %63 = arith.subf %62, %61 : vector<1x128xf32>
    %64 = tpu.concatenate %5, %8, %11, %16, %19, %24, %27, %32, %36, %39, %42, %47, %50, %55, %58, %63 in 0 : vector<1x128xf32>, vector<1x128xf32>, vector<1x128xf32>, vector<1x128xf32>, vector<1x128xf32>, vector<1x128xf32>, vector<1x128xf32>, vector<1x128xf32>, vector<1x128xf32>, vector<1x128xf32>, vector<1x128xf32>, vector<1x128xf32>, vector<1x128xf32>, vector<1x128xf32>, vector<1x128xf32>, vector<1x128xf32> -> vector<16x128xf32>
    %c2 = arith.constant 2 : index
    %c0_24 = arith.constant 0 : index
    %65 = vector.load %arg2[%c2, %c0_24] : memref<18x128xf32, #tpu.memory_space<vmem>>, vector<16x128xf32>
    tpu.vector_store %arg2[%c2, %c0_24], %64 {strides = array<i32>} : memref<18x128xf32, #tpu.memory_space<vmem>>, vector<16x128xf32>,
    return
  }
  func.func @transform_0(%arg0: i32) -> (i32, i32) {
    %c0_i32 = arith.constant 0 : i32
    %c0_i32_0 = arith.constant 0 : i32
    return %c0_i32, %arg0 : i32, i32
  }
  func.func @transform_1(%arg0: i32) -> (i32, i32) {
    %c0_i32 = arith.constant 0 : i32
    %c0_i32_0 = arith.constant 0 : i32
    return %c0_i32, %arg0 : i32, i32
  }
}

</mosaic_0001>

<bundles_post_ra>
// kernel: tpu_custom_call.1
= control target key start
LH: loop header
LB: loop body
LE: loop exit
PB: predicated region body
PF: predicated region fallthrough
CT: control target
= control target key end

     0   :  { %6 = vsyncpa [#allocation3], 0  ;;  %s981_s0 = inlined_call_operand.hbm [shape: f32[2,1024], index: 0, kind: input, shape index: {}]   ;;  %s982_s1 = inlined_call_operand.hbm [shape: f32[18,1024], index: 1, kind: output, shape index: {}]  }
   0x1   :  { %8 = vsyncpa [#allocation3 + $0x1], 0 }
   0x2   :  { %9 = vsyncpa [#allocation4], 0 }
   0x3   :  { %11 = vsyncpa [#allocation4 + $0x1], 0  ;;  %s796_s6 = smov 0   ;;  %s798_s7 = smov 0  }
   0x4   :  { %s800_s8 = smov 0   ;;  %s802_s9 = smov 0  }
   0x5 LB: > { %s817_s10 = sadd.s32 4294967295, %s774_s9   ;;  %s605_s11 = sadd.s32 4294967294, %s774_s9   ;;  %s774_s9 = sphi %s802_s9, %s991_s9   ;;  %s770_s8 = sphi %s800_s8, %s990_s8   ;;  %s766_s7 = sphi %s798_s7, %s989_s7   ;;  %s762_s6 = sphi %s796_s6, %s988_s6  }
   0x6   : > { %s821_s12 = sadd.s32 1, %s774_s9   ;;  %s24_s13 = sadd.s32 1, %s770_s8 }
   0x7   : > { %s21_s14 = ssub.s32 %s774_s9, %s821_s12  ;;  %p31_p0 = scmp.ne.s32.totalorder %s770_s8, %s766_s7 }
   0x8   : > { %p22_p1 = scmp.eq.s32.totalorder %s21_s14, 0  ;;  %p32_p2 = scmp.eq.s32.totalorder %s774_s9, 0 }
   0x9   : > { %p37_p3 = scmp.ne.s32.totalorder %s766_s7, %s762_s6  ;;  %p38_p4 = scmp.eq.s32.totalorder %s817_s10, 0 }
   0xa   : > { %s833_s15 = scalar_select %p22_p1, %s770_s8, %s24_s13  }
   0xb   : > { %p835_p5 = por %p32_p2, %p31_p0  ;;  %p839_p6 = por %p38_p4, %p37_p3 }
   0xc   : > { %p61_p7 = scmp.eq.s32.totalorder %s817_s10, 7  ;;  %p67_p8 = scmp.eq.s32.totalorder %s605_s11, 7 }
   0xd   : > { %p634_p9 = scmp.lt.s32.totalorder %s774_s9, 8  ;;  %s87_s20 = sand.u32 1, %s770_s8  }
   0xe   : > { %p845_p10 = por %p61_p7, %p31_p0  ;;  %p849_p11 = por %p67_p8, %p37_p3 }
   0xf   : > { %s609_s21 = sshll.u32 %s774_s9, 1  ;;  %s608_s22 = sshll.u32 %s87_s20, 1 }
  0x10   : > { %s95_s25 = scalar_lea.hbm %s981_s0, %s609_s21  ;;  %s91_s27 = scalar_lea.vmem [#allocation2], %s608_s22 }
  0x11   : > { %s97_s26 = sshll.u32 %s95_s25, 4  ;;  %s99_s28 = sshll.u32 %s91_s27, 4  ;;  %s98_s26 = int_to_ptr.hbm [resolvable:$true] %s97_s26  ;;  %s100_s28 = int_to_ptr.vmem [resolvable:$true] %s99_s28 }
  0x12   : > { %p860_p12 = pnand %p634_p9, %p835_p5  ;;  %p610_p13 = scmp.ge.s32.totalorder %s774_s9, 1 }
  0x13   : > { %p104_p0 = scmp.lt.s32.totalorder %s774_s9, 9  ;;  %s88_s30 = scalar_lea.sflag [#allocation3], %s87_s20 }
  0x14   : > { %s678_s2 = sshra.s32 %s98_s26, 4  ;;  %p682_p2 = pneg %p860_p12  ;;  %s679_s2 = int_to_ptr.hbm [resolvable:$true] %s678_s2 }
  0x15   : > { %s680_s3 = scalar_lea.hbm %s679_s2, 2  ;;  %s685_s11 = scalar_lea.hbm %s981_s0, 16 }
  0x16   : > { %p681_p1 = scmp.ne.s32.totalorder %s679_s2, %s680_s3  ;;  %p686_p5 = scmp.lt.s32.totalorder %s679_s2, %s981_s0 }
  0x17   : > { %p687_p7 = scmp.lt.s32.totalorder %s685_s11, %s680_s3 }
  0x18   : > { %p683_p3 = pnand %p682_p2, %p681_p1 }
  0x19   : > { %p688_p8 = por %p687_p7, %p686_p5 }
  0x1a   : > { %p684_p4 = pneg %p683_p3 }
  0x1c   : > { %p689_p9 = pnand %p688_p8, %p684_p4 }
  0x1e   : > { %692 = shalt.err (!%p689_p9)
}
  0x1f   : > { %629 = dma.hbm_to_vmem [thread:$0]  (!%p860_p12), %s98_s26, 32, %s100_s28, %s88_s30  }
  0x20   : > { %p105_p1 = pnand %p610_p13, %p104_p0 }
  0x21   : > { %s881_s16 = sand.u32 (!%p105_p1), 1, %s766_s7  }
  0x22   : > { %108 = sbr.rel (%p105_p1) target bundleno = 162 (0xa2), region = 24  ;;  %s611_s20 = sshll.u32 (!%p105_p1), %s881_s16, 1 }
  0x23   : > { %s111_s21 = scalar_lea.sflag (!%p105_p1), [#allocation3], %s881_s16  ;;  %s114_s22 = scalar_lea.vmem (!%p105_p1), [#allocation2], %s611_s20 }
  0x27   : > { %753 = dma.done.wait (%p839_p6), %s111_s21, 32  }
  0x28   : > { %755 = vsyncadd (%p839_p6), %s111_s21, 4294967264  ;;  %s621_s23 = smul.u32 24, %s881_s16  ;;  %v134_v0 = vld [vmem:[%s114_s22] sm:$0x3]  ;;  %v776_v13 = vmov 683565275  }
  0x29   : > { %v893_v1 = vmul.f32 3.1415927, %v134_v0  ;;  %v777_v15 = vmov 2475754826   ;;  %v778_v17 = vmov 2131351028  }
  0x2a   : > { %s890_s24 = scalar_lea.vmem [#allocation5], %s621_s23  ;;  %v779_v19 = vmov 2102212464   ;;  %v780_v21 = vmov 920167782   ;;  %s618_s17 = sshll.u32 %s817_s10, 3 }
  0x2b   : > { %135 = vst [vmem:[%s890_s24] sm:$0x3] %v134_v0  ;;  %v140_v2 = vand.u32 2139095040, %v893_v1  ;;  %v137_v4 = vand.u32 2147483647, %v893_v1  ;;  %v781_v27 = vmov 1326507024   ;;  %s528_s27 = scalar_lea.hbm %s982_s1, %s618_s17 }
  0x2c   : > { %vm139_vm12 = vcmp.lt.s32.totalorder %v893_v1, 0  ;;  %s529_s10 = sshll.u32 %s890_s24, 4  ;;  %s531_s28 = sshll.u32 %s528_s27, 4  ;;  %s948_s10 = int_to_ptr.vmem [resolvable:$true] %s529_s10  ;;  %s532_s28 = int_to_ptr.hbm [resolvable:$true] %s531_s28 }
  0x2d   : > { %v141_v3 = vshrl.u32 %v140_v2, 23  ;;  %v144_v7 = vand.u32 8388607, %v137_v4  ;;  %v782_v2 = vmov 0   ;;  %vm138_vm13 = vcmp.le.f32.partialorder %v137_v4, 0.7853982 }
  0x2e   : > { %s518_s29 = scalar_lea.sflag [#allocation4], %s881_s16  ;;  %s722_s30 = sshra.s32 %s532_s28, 4  ;;  %s723_s30 = int_to_ptr.hbm [resolvable:$true] %s722_s30 }
  0x2f   : > { %v612_v5 = vadd.s32 4294967169, %v141_v3  ;;  %v145_v10 = vor.u32 8388608, %v144_v7  ;;  %s724_s2 = scalar_lea.hbm %s723_s30, 24  ;;  %s728_s5 = scalar_lea.hbm %s982_s1, 192 }
  0x30   : > { %p725_p6 = scmp.ne.s32.totalorder %s723_s30, %s724_s2  ;;  %p729_p0 = scmp.lt.s32.totalorder %s723_s30, %s982_s1 }
  0x31   : > { %v147_v6 = vadd.s32 1, %v612_v5  ;;  %v902_v29 = vshll.u32 %v145_v10, 8  ;;  %p730_p2 = scmp.lt.s32.totalorder %s728_s5, %s724_s2 }
  0x32   : > { %p726_p12 = pnand %p725_p6, %p845_p10 }
  0x33   : > { %vm148_vm0 = vcmp.gt.s32.totalorder %v147_v6, 0  ;;  %v186_v41 = vand.u32 65535, %v902_v29  ;;  %v187_v42 = vshrl.u32 %v902_v29, 16  ;;  %p731_p3 = por %p730_p2, %p729_p0 }
  0x34   : > { %v149_v8 = vsel %vm148_vm0, %v147_v6, 0  ;;  %p727_p13 = pneg %p726_p12 }
  0x35   : > { %v151_v9 = vand.u32 31, %v149_v8  ;;  %v899_v11 = vshrl.u32 %v149_v8, 5 }
  0x36   : > { %p732_p4 = pnand %p731_p3, %p727_p13 }
  0x37   : > { %v152_v12 = vsub.s32 32, %v151_v9  ;;  %v154_v14 = vshll.u32 %v776_v13, %v151_v9  ;;  %v157_v16 = vshll.u32 %v777_v15, %v151_v9  ;;  %v160_v18 = vshll.u32 %v778_v17, %v151_v9 }
  0x38   : > { %v163_v20 = vshll.u32 %v779_v19, %v151_v9  ;;  %v166_v22 = vshll.u32 %v780_v21, %v151_v9  ;;  %vm169_vm1 = vcmp.lt.s32.totalorder %v899_v11, 1  ;;  %vm172_vm2 = vcmp.lt.s32.totalorder %v899_v11, 4 }
  0x39   : > { %v155_v23 = vshrl.u32 %v777_v15, %v152_v12  ;;  %v158_v24 = vshrl.u32 %v778_v17, %v152_v12  ;;  %v161_v25 = vshrl.u32 %v779_v19, %v152_v12  ;;  %v164_v26 = vshrl.u32 %v780_v21, %v152_v12 }
  0x3a   : > { %v167_v28 = vshrl.u32 %v781_v27, %v152_v12  ;;  %vm171_vm3 = vcmp.lt.s32.totalorder %v899_v11, 3  ;;  %vm170_vm4 = vcmp.lt.s32.totalorder %v899_v11, 2  ;;  %v153_v49 = vshrl.u32 %v776_v13, %v152_v12 }
  0x3b   : > { %v156_v30 = vor.u32 %v155_v23, %v154_v14  ;;  %v159_v31 = vor.u32 %v158_v24, %v157_v16  ;;  %v162_v32 = vor.u32 %v161_v25, %v160_v18  ;;  %v165_v33 = vor.u32 %v164_v26, %v163_v20 }
  0x3c   : > { %v168_v34 = vor.u32 %v167_v28, %v166_v22 }
  0x3d   : > { %v177_v35 = vsel %vm169_vm1, %v156_v30, %v159_v31  ;;  %v181_v36 = vsel %vm169_vm1, %v159_v31, %v162_v32  ;;  %v178_v37 = vsel %vm172_vm2, %v165_v33, 920167782  ;;  %v173_v62 = vsel %vm169_vm1, %v153_v49, %v156_v30 }
  0x3e   : > { %v182_v38 = vsel %vm172_vm2, %v168_v34, 1326507024  ;;  %v179_v39 = vsel %vm171_vm3, %v162_v32, %v178_v37  ;;  %v174_v0 = vsel %vm172_vm2, %v162_v32, 2102212464 }
  0x3f   : > { %v183_v40 = vsel %vm171_vm3, %v165_v33, %v182_v38  ;;  %v180_v43 = vsel %vm170_vm4, %v177_v35, %v179_v39  ;;  %v175_v13 = vsel %vm171_vm3, %v159_v31, %v174_v0 }
  0x40   : > { %v184_v44 = vsel %vm170_vm4, %v181_v36, %v183_v40  ;;  %v210_v47 = vand.u32 65535, %v180_v43  ;;  %v211_v48 = vshrl.u32 %v180_v43, 16  ;;  %v176_v21 = vsel %vm170_vm4, %v173_v62, %v175_v13 }
  0x41   : > { %v188_v45 = vand.u32 65535, %v184_v44  ;;  %v189_v46 = vshrl.u32 %v184_v44, 16  ;;  %v230_v25 = vmul.u32 %v902_v29, %v176_v21  ;;  %vm280_vm4 = vweird.f32 %v893_v1 }
  0x42   : > { %v212_v53 = vmul.u32 %v210_v47, %v186_v41  ;;  %v213_v54 = vmul.u32 %v211_v48, %v186_v41  ;;  %v214_v55 = vmul.u32 %v210_v47, %v187_v42  ;;  %v215_v59 = vmul.u32 %v211_v48, %v187_v42 }
  0x43   : > { %v190_v50 = vmul.u32 %v188_v45, %v186_v41  ;;  %v191_v51 = vmul.u32 %v189_v46, %v186_v41  ;;  %v192_v52 = vmul.u32 %v188_v45, %v187_v42  ;;  %v193_v56 = vmul.u32 %v189_v46, %v187_v42 }
  0x44   : > { %v216_v60 = vshll.u32 %v213_v54, 16  ;;  %v218_v61 = vshll.u32 %v214_v55, 16  ;;  %v217_v10 = vshrl.u32 %v213_v54, 16  ;;  %v219_v17 = vshrl.u32 %v214_v55, 16 }
  0x45   : > { %v194_v57 = vshll.u32 %v191_v51, 16  ;;  %v196_v58 = vshll.u32 %v192_v52, 16  ;;  %v195_v6 = vshrl.u32 %v191_v51, 16  ;;  %v197_v14 = vshrl.u32 %v192_v52, 16 }
  0x46   : > { %vm220_vm6 = vc.u32 %v212_v53, %v216_v60  ;;  %v222_v5 = vadd.s32 %v216_v60, %v212_v53 }
  0x47   : > { %vm198_vm5 = vc.u32 %v190_v50, %v194_v57  ;;  %v200_v63 = vadd.s32 %v194_v57, %v190_v50  ;;  %v221_v8 = vsel %vm220_vm6, 1, %v782_v2  ;;  %vm496_vm6 = vcmask 1041408  }
  0x48   : > { %v199_v3 = vsel %vm198_vm5, 1, %v782_v2  ;;  %v223_v12 = vadd.s32 %v221_v8, %v215_v59  ;;  %vm224_vm8 = vc.u32 %v222_v5, %v218_v61  ;;  %v226_v20 = vadd.s32 %v222_v5, %v218_v61 }
  0x49   : > { %v201_v7 = vadd.s32 %v199_v3, %v193_v56  ;;  %vm202_vm7 = vc.u32 %v200_v63, %v196_v58  ;;  %v225_v16 = vsel %vm224_vm8, 1, %v782_v2  ;;  %vm494_vm5 = vcmask 1040384  }
  0x4a   : > { %v203_v9 = vsel %vm202_vm7, 1, %v782_v2  ;;  %v227_v18 = vadd.s32 %v225_v16, %v223_v12  ;;  %vm498_vm7 = vcmask 1042432   ;;  %vm500_vm8 = vcmask 1043456  }
  0x4b   : > { %v205_v15 = vadd.s32 %v203_v9, %v201_v7 }
  0x4c   : > { %v228_v22 = vadd.s32 %v227_v18, %v217_v10 }
  0x4d   : > { %v206_v19 = vadd.s32 %v205_v15, %v195_v6 }
  0x4e   : > { %v229_v24 = vadd.s32 %v228_v22, %v219_v17 }
  0x4f   : > { %v207_v23 = vadd.s32 %v206_v19, %v197_v14 }
  0x50   : > { %v233_v26 = vadd.s32 1, %v229_v24 }
  0x51   : > { %vm232_vm9 = vc.u32 %v207_v23, %v226_v20  ;;  %v231_v11 = vadd.s32 %v226_v20, %v207_v23 }
  0x52   : > { %v234_v27 = vsel %vm232_vm9, %v233_v26, %v229_v24  ;;  %vm502_vm9 = vcmask 1044480  }
  0x53   : > { %v235_v28 = vadd.s32 %v234_v27, %v230_v25 }
  0x55   : > { %v236_v30 = vadd.s32 536870912, %v235_v28 }
  0x57   : > { %v237_v31 = vshrl.u32 %v236_v30, 30 }
  0x59   : > { %v238_v32 = vshll.u32 %v237_v31, 30  ;;  %v261_v49 = vsub.s32 4, %v237_v31 }
  0x5b   : > { %v239_v33 = vsub.s32 %v235_v28, %v238_v32  ;;  %v262_v52 = vsel %vm139_vm12, %v261_v49, %v237_v31 }
  0x5c   : > { %v264_v55 = vsel %vm138_vm13, 0, %v262_v52 }
  0x5d   : > { %vm240_vm10 = vcmp.lt.s32.totalorder %v239_v33, 0  ;;  %v241_v34 = vsub.s32 0, %v239_v33  ;;  %v281_v60 = vadd.s32 3, %v264_v55  ;;  %v436_v3 = vand.u32 3, %v264_v55 }
  0x5f   : > { %v242_v35 = vsel %vm240_vm10, %v241_v34, %v239_v33  ;;  %v282_v2 = vand.u32 3, %v281_v60  ;;  %vm441_vm15 = vcmp.eq.s32.totalorder %v436_v3, 2  ;;  %vm438_vm2 = vcmp.eq.s32.totalorder %v436_v3, 0 }
  0x60   : > { %v243_v36 = vclz %v242_v35  ;;  %vm437_vm3 = vcmp.lt.s32.totalorder %v436_v3, 2  ;;  %vm504_vm10 = vcmask 1045504  }
  0x61   : > { %vm287_vm14 = vcmp.eq.s32.totalorder %v282_v2, 2  ;;  %vm283_vm0 = vcmp.lt.s32.totalorder %v282_v2, 2  ;;  %vm284_vm1 = vcmp.eq.s32.totalorder %v282_v2, 0 }
  0x62   : > { %v613_v37 = vadd.s32 4294967294, %v243_v36 }
  0x64   : > { %vm614_vm11 = vcmp.lt.s32.totalorder %v613_v37, 0 }
  0x65   : > { %v246_v38 = vsel %vm614_vm11, 0, %v613_v37  ;;  %vm506_vm11 = vcmask 1046528  }
  0x66   : > { %v247_v39 = vsub.s32 32, %v246_v38  ;;  %v248_v40 = vshll.u32 %v239_v33, %v246_v38  ;;  %v251_v41 = vsub.s32 4294967266, %v246_v38 }
  0x68   : > { %v249_v29 = vshrl.u32 %v231_v11, %v247_v39  ;;  %v252_v42 = vadd.s32 127, %v251_v41 }
  0x6a   : > { %v250_v43 = vor.u32 %v249_v29, %v248_v40  ;;  %v253_v44 = vshll.u32 %v252_v42, 23 }
  0x6c   : > { %v254_v45 = vor.u32 4788187, %v253_v44  ;;  %v257_v46 = vcvt.s32.f32 %v250_v43 }
  0x6e   : > { %v255_v47 = vand.u32 2147483647, %v254_v45 }
  0x70   : > { %v258_v48 = vmul.f32 %v257_v46, %v255_v47 }
  0x72   : > { %v259_v50 = vxor.u32 2147483648, %v258_v48 }
  0x74   : > { %v260_v51 = vsel %vm139_vm12, %v259_v50, %v258_v48 }
  0x75   : > { %v263_v53 = vsel %vm138_vm13, %v893_v1, %v260_v51 }
  0x76   : > { %v265_v54 = vmul.f32 %v263_v53, %v263_v53 }
  0x78   : > { %v266_v56 = vmul.f32 -0.001358992, %v265_v54  ;;  %v273_v57 = vmul.f32 -0.00019511016, %v265_v54 }
  0x7a   : > { %v267_v58 = vadd.f32 0.041655596, %v266_v56  ;;  %v274_v59 = vadd.f32 0.008332121, %v273_v57 }
  0x7c   : > { %v268_v61 = vmul.f32 %v267_v58, %v265_v54  ;;  %v275_v62 = vmul.f32 %v274_v59, %v265_v54 }
  0x7e   : > { %v269_v63 = vadd.f32 -0.4999988, %v268_v61  ;;  %v276_v0 = vadd.f32 -0.16666654, %v275_v62 }
  0x80   : > { %v270_v5 = vmul.f32 %v269_v63, %v265_v54  ;;  %v277_v4 = vmul.f32 %v276_v0, %v265_v54 }
  0x82   : > { %v271_v6 = vadd.f32 1.0, %v270_v5  ;;  %v278_v7 = vadd.f32 1.0, %v277_v4 }
  0x84   : > { %v279_v8 = vmul.f32 %v278_v7, %v263_v53  ;;  %v288_v9 = vxor.u32 2147483648, %v271_v6 }
  0x86   : > { %v285_v10 = vxor.u32 2147483648, %v279_v8  ;;  %v289_v12 = vsel %vm287_vm14, %v288_v9, %v279_v8  ;;  %v443_v13 = vsel %vm441_vm15, %v288_v9, %v279_v8 }
  0x88   : > { %v286_v14 = vsel %vm284_vm1, %v271_v6, %v285_v10  ;;  %v440_v15 = vsel %vm438_vm2, %v271_v6, %v285_v10 }
  0x89   : > { %v290_v16 = vsel %vm283_vm0, %v286_v14, %v289_v12  ;;  %v444_v17 = vsel %vm437_vm3, %v440_v15, %v443_v13 }
  0x8a   : > { %v291_v18 = vsel %vm280_vm4, nan, %v290_v16  ;;  %v445_v19 = vsel %vm280_vm4, nan, %v444_v17 }
  0x8b   : > { %v446_v20 = vmul.f32 2.0, %v291_v18  ;;  %v459_v21 = vrot.slane %v445_v19, 7  ;;  %v480_v22 = vrot.slane %v291_v18, 1 }
  0x8d   : > { %v447_v23 = vmul.f32 %v446_v20, %v445_v19  ;;  %v448_v24 = vmul.f32 %v446_v20, %v291_v18  ;;  %v495_v25 = vsel %vm494_vm5, %v291_v18, %v459_v21  ;;  %v508_v26 = vsel %vm494_vm5, %v480_v22, %v445_v19 }
  0x8f   : > { %v449_v27 = vsub.f32 1.0, %v448_v24  ;;  %v450_v28 = vmul.f32 2.0, %v447_v23  ;;  %v462_v30 = vrot.slane %v447_v23, 6  ;;  %v482_v1 = vrot.slane %v447_v23, 7 }
  0x91   : > { %v451_v31 = vmul.f32 %v450_v28, %v449_v27  ;;  %v452_v32 = vmul.f32 %v450_v28, %v447_v23  ;;  %v465_v33 = vrot.slane %v449_v27, 5  ;;  %v497_v34 = vsel %vm496_vm6, %v495_v25, %v462_v30 }
  0x92   : > { %v484_v35 = vrot.slane %v449_v27, 6  ;;  %v509_v36 = vsel %vm496_vm6, %v508_v26, %v482_v1 }
  0x93   : > { %v453_v37 = vsub.f32 1.0, %v452_v32  ;;  %v454_v11 = vmul.f32 2.0, %v451_v31  ;;  %v468_v38 = vrot.slane %v451_v31, 4  ;;  %v499_v39 = vsel %vm498_vm7, %v497_v34, %v465_v33 }
  0x94   : > { %v486_v40 = vrot.slane %v451_v31, 5  ;;  %v510_v41 = vsel %vm498_vm7, %v509_v36, %v484_v35 }
  0x95   : > { %v455_v29 = vmul.f32 %v454_v11, %v453_v37  ;;  %v456_v42 = vmul.f32 %v454_v11, %v451_v31  ;;  %v471_v43 = vrot.slane %v453_v37, 3  ;;  %v501_v44 = vsel %vm500_vm8, %v499_v39, %v468_v38 }
  0x96   : > { %v488_v45 = vrot.slane %v453_v37, 4  ;;  %v511_v46 = vsel %vm500_vm8, %v510_v41, %v486_v40 }
  0x97   : > { %v457_v47 = vsub.f32 1.0, %v456_v42  ;;  %v474_v48 = vrot.slane %v455_v29, 2  ;;  %v503_v49 = vsel %vm502_vm9, %v501_v44, %v471_v43  ;;  %v490_v50 = vrot.slane %v455_v29, 3 }
  0x98   : > { %v512_v51 = vsel %vm502_vm9, %v511_v46, %v488_v45 }
  0x99   : > { %v477_v52 = vrot.slane %v457_v47, 1  ;;  %v505_v53 = vsel %vm504_vm10, %v503_v49, %v474_v48  ;;  %v492_v54 = vrot.slane %v457_v47, 2  ;;  %v513_v55 = vsel %vm504_vm10, %v512_v51, %v490_v50 }
  0x9b   : > { %v507_v56 = vsel %vm506_vm11, %v505_v53, %v477_v52  ;;  %v514_v57 = vsel %vm506_vm11, %v513_v55, %v492_v54 }
  0x9c   : > { %515 = vst [vmem:[%s890_s24 + $0x2] sm:$0xff] %v507_v56 }
  0x9d   : > { %516 = vst [vmem:[%s890_s24 + $0xa] sm:$0xff] %v514_v57 }
  0x9e   : > { %735 = shalt.err (!%p732_p4)
}
  0x9f   : > { %s783_s14 = smov 128   ;;  %s784_s16 = smov 1024  }
  0xa0   : > { %s785_s20 = smov 8  }
  0xa1   : > { %624 = dma.vmem_to_hbm [thread:$0]  (%p845_p10), %s948_s10, 384, %s532_s28, %s518_s29, %s783_s14, %s784_s16, %s785_s20  }
  0xa2 PF: > { %p635_p5 = scmp.ge.s32.totalorder %s774_s9, 2  ;;  %s546_s21 = sand.u32 1, %s762_s6  }
  0xa3   : > { %s547_s22 = scalar_lea.sflag [#allocation4], %s546_s21 }
  0xa4   : > { %p631_p7 = pnand %p635_p5, %p849_p11 }
  0xa6   : > { %p632_p8 = pneg %p631_p7 }
  0xa8   : > { %757 = dma.done.wait (%p632_p8), %s547_s22, 384  }
  0xa9   : > { %759 = vsyncadd (%p632_p8), %s547_s22, 4294966912  ;;  %p14_p9 = scmp.ge.s32.totalorder %s821_s12, 10   ;;  %s988_s6 = smov %s766_s7 }
  0xaa   : > { %s989_s7 = smov %s770_s8  ;;  %s990_s8 = smov %s833_s15 }
  0xab   : > { %s991_s9 = smov %s821_s12  ;;  %16 = sbr.rel (!%p14_p9) target bundleno = 5 (0x5), region = 69 }
  0xb0   :  { %553 = vsyncpa [#allocation3], 1 }
  0xb1   :  { %555 = vsyncpa [#allocation3 + $0x1], 1 }
  0xb2   :  { %556 = vsyncpa [#allocation4], 1 }
  0xb3   :  { %558 = vsyncpa [#allocation4 + $0x1], 1 }

</bundles_post_ra>
